<compile_context>
chip_gen: v5e
topology: v5e:2x2
jax: 0.10.0
libtpu: 0.0.40
codegen_flags: <defaults>
</compile_context>

<pallas_src>
import functools

import jax
import jax.numpy as jnp
from jax import lax
from jax.experimental import pallas as pl
from jax.experimental.pallas import tpu as pltpu

FEAT = 64                      # fixed by nn.Linear(64, 64) in the module
_MIB = 1024 * 1024


def _tpu_generation():
    """Best-effort TPU generation detection (falls back to 'unknown')."""
    try:
        kind = jax.devices()[0].device_kind.lower()
    except Exception:
        return "unknown"
    if "v5 lite" in kind or "v5lite" in kind or "v5e" in kind:
        return "v5e"
    if "v6" in kind:
        return "v6e"
    if "v7" in kind or "tpu7" in kind:
        return "v7x"
    return "unknown"


# Per-generation streamed-block size (bytes) and TensorCores to shard across.
_GEN_CONFIG = {
    "v5e": (4 * _MIB, 1),
    "v6e": (8 * _MIB, 1),
    "v7x": (16 * _MIB, 2),
    "unknown": (4 * _MIB, 1),
}


def _partial_sum_kernel(data_ref, psum_ref, *, valid_rows, blocks_per_core,
                        total_blocks):
    """Streams one [rows, lanes] block per step; accumulates per-sublane column
    sums into psum_ref ([1, 8, lanes]), resident across the 'arbitrary' axis."""
    c = pl.program_id(0)
    j = pl.program_id(1)
    rows, lanes = data_ref.shape

    @pl.when(j == 0)
    def _():
        psum_ref[...] = jnp.zeros_like(psum_ref)

    g = c * blocks_per_core + j          # logical block index along the data

    def accumulate(x):                   # x: [rows, lanes] float32
        if rows % 8 == 0:
            part = jnp.sum(x.reshape(rows // 8, 8, lanes), axis=0)   # [8, L]
            psum_ref[...] += part[None]
        else:                            # tiny single-block case (rows == full dim)
            part = jnp.sum(x, axis=0, keepdims=True)                 # [1, L]
            psum_ref[:, 0:1, :] += part[None]

    # All blocks before the last logical block are fully in range.
    @pl.when(g < total_blocks - 1)
    def _():
        accumulate(data_ref[...].astype(jnp.float32))

    # Last logical block (possibly partial / Pallas-padded with unspecified
    # values) and any overhang steps on a core with fewer real blocks:
    # zero the out-of-range rows before summing.
    @pl.when(g >= total_blocks - 1)
    def _():
        x = data_ref[...].astype(jnp.float32)
        row_ids = g * rows + lax.broadcasted_iota(jnp.int32, (rows, 1), 0)
        accumulate(jnp.where(row_ids < valid_rows, x, 0.0))


def _mean_mlp_kernel(psum_ref, w_ref, b_ref, o_ref, *, inv_n, packed):
    """Fold partial sums -> mean -> 3-layer MLP -> residual. Runs once."""
    s = psum_ref[...]                                               # [C, 8, L]
    s = jnp.sum(s.reshape(-1, s.shape[-1]), axis=0, keepdims=True)  # [1, L]
    if packed:   # un-pack the two 64-lane halves (even / odd rows)
        d = (s[:, :FEAT] + s[:, FEAT:]) * inv_n
    else:
        d = s * inv_n

    dn = (((1,), (1,)), ((), ()))        # contract x dim-1 with W dim-1 == x @ W.T
    x = lax.dot_general(d, w_ref[0], dn,
                        preferred_element_type=jnp.float32) + b_ref[0:1, :]
    x = jnp.maximum(x, 0.0)
    x = lax.dot_general(x, w_ref[1], dn,
                        preferred_element_type=jnp.float32) + b_ref[1:2, :]
    x = jnp.maximum(x, 0.0)
    out = lax.dot_general(x, w_ref[2], dn,
                          preferred_element_type=jnp.float32) + b_ref[2:3, :]
    o_ref[...] = out + d                 # residual connection


def pack_params(params):
    """Stack the six tiny Linear params into two arrays (hoist out of hot loops)."""
    w = jnp.stack([params["fc1.weight"], params["fc2.weight"],
                   params["fc3.weight"]]).astype(jnp.float32)        # [3, 64, 64]
    b = jnp.stack([params["fc1.bias"], params["fc2.bias"],
                   params["fc3.bias"]]).astype(jnp.float32)          # [3, 64]
    return w, b


def proto_estimator_forward(data, params=None, *, packed_params=None,
                            block_bytes=None):
    """data: [N, 64]; params: {fcN.weight [64,64], fcN.bias [64]}. Returns [64]."""
    data = jnp.asarray(data)
    n, feat = data.shape
    assert feat == FEAT and n >= 1
    if packed_params is None:
        packed_params = pack_params(params)
    w, b = packed_params

    # Stream the native dtype (upcast happens per block inside the kernel);
    # only exotic dtypes pay a wrapper-side cast.
    if data.dtype != jnp.float32 and data.dtype != jnp.bfloat16:
        data = data.astype(jnp.float32)
    itemsize = data.dtype.itemsize

    gen = _tpu_generation()
    default_block_bytes, num_cores = _GEN_CONFIG[gen]
    if block_bytes is None:
        block_bytes = default_block_bytes

    # Pack two 64-wide rows per 128-lane row when possible (free bitcast
    # reshape in HBM); odd N streams the natural [N, 64] layout (no pad copy).
    packed = (n % 2 == 0)
    view = data.reshape(n // 2, 2 * FEAT) if packed else data
    view_rows, lanes = view.shape

    # Block rows: multiple of 16 (covers f32 (8,128) and bf16 (16,128) sublane
    # tiling) or the full array when everything fits in one block.
    block_rows = max(16, (block_bytes // (lanes * itemsize)) // 16 * 16)
    if view_rows <= block_rows:
        block_rows = view_rows
        total_blocks = 1
    else:
        total_blocks = pl.cdiv(view_rows, block_rows)

    num_cores = max(1, min(num_cores, total_blocks))
    blocks_per_core = pl.cdiv(total_blocks, num_cores)

    # Keep double-buffered data blocks (+ headroom) under each generation's
    # VMEM; v7x only has 64 MiB physical (32 MiB scoped default).
    vmem_limit = 2 * block_rows * lanes * itemsize + 12 * _MIB
    vmem_limit = int(min(vmem_limit, 56 * _MIB if gen == "v7x" else 100 * _MIB))

    cost = pl.CostEstimate(
        flops=n * FEAT + 3 * 2 * FEAT * FEAT + 8 * FEAT,
        transcendentals=0,
        bytes_accessed=n * FEAT * itemsize
        + (num_cores * 8 * lanes + 3 * FEAT * FEAT + 4 * FEAT) * 4,
    )

    psum_kernel = functools.partial(
        _partial_sum_kernel, valid_rows=view_rows,
        blocks_per_core=blocks_per_core, total_blocks=total_blocks)

    psums = pl.pallas_call(
        psum_kernel,
        out_shape=jax.ShapeDtypeStruct((num_cores, 8, lanes), jnp.float32),
        grid_spec=pltpu.PrefetchScalarGridSpec(
            num_scalar_prefetch=0,
            grid=(num_cores, blocks_per_core),
            in_specs=[pl.BlockSpec(
                (block_rows, lanes),
                lambda c, j: (jnp.minimum(c * blocks_per_core + j,
                                          total_blocks - 1), 0))],
            out_specs=pl.BlockSpec((1, 8, lanes), lambda c, j: (c, 0, 0)),
        ),
        compiler_params=pltpu.CompilerParams(
            # 'parallel' axis shards the HBM stream across TensorCores (v7x);
            # the block axis is a reduction (resident accumulator) -> 'arbitrary'.
            dimension_semantics=("parallel", "arbitrary"),
            vmem_limit_bytes=vmem_limit),
        cost_estimate=cost,
    )(view)

    mlp_kernel = functools.partial(_mean_mlp_kernel, inv_n=1.0 / n, packed=packed)
    out = pl.pallas_call(
        mlp_kernel,
        out_shape=jax.ShapeDtypeStruct((1, FEAT), jnp.float32),
        grid_spec=pltpu.PrefetchScalarGridSpec(
            num_scalar_prefetch=0,
            grid=(1,),
            in_specs=[pl.BlockSpec((num_cores, 8, lanes), lambda i: (0, 0, 0)),
                      pl.BlockSpec((3, FEAT, FEAT), lambda i: (0, 0, 0)),
                      pl.BlockSpec((3, FEAT), lambda i: (0, 0))],
            out_specs=pl.BlockSpec((1, FEAT), lambda i: (0, 0)),
        ),
        compiler_params=pltpu.CompilerParams(
            dimension_semantics=("arbitrary",)),
    )(psums, w, b)

    return out.reshape(FEAT)   # .squeeze() in the PyTorch module


def _reference_forward(data, params):
    d = jnp.mean(data.astype(jnp.float32), axis=0, keepdims=True)
    x = jax.nn.relu(d @ params["fc1.weight"].T + params["fc1.bias"])
    x = jax.nn.relu(x @ params["fc2.weight"].T + params["fc2.bias"])
    out = x @ params["fc3.weight"].T + params["fc3.bias"] + d
    return out.reshape(FEAT)


if __name__ == "__main__":
    key = jax.random.PRNGKey(0)
    k_a, k_b, k_c, k_d, k1, k2, k3, k4, k5, k6 = jax.random.split(key, 10)

    # Deterministic parameter init (shapes from nn.Linear(64, 64)).
    scale = 1.0 / jnp.sqrt(FEAT)
    params = {
        "fc1.weight": jax.random.uniform(k1, (FEAT, FEAT), jnp.float32, -scale, scale),
        "fc1.bias":   jax.random.uniform(k2, (FEAT,), jnp.float32, -scale, scale),
        "fc2.weight": jax.random.uniform(k3, (FEAT, FEAT), jnp.float32, -scale, scale),
        "fc2.bias":   jax.random.uniform(k4, (FEAT,), jnp.float32, -scale, scale),
        "fc3.weight": jax.random.uniform(k5, (FEAT, FEAT), jnp.float32, -scale, scale),
        "fc3.bias":   jax.random.uniform(k6, (FEAT,), jnp.float32, -scale, scale),
    }
    packed = pack_params(params)   # hoisted once (perf-review item)

    # 1) Small, even N: single packed block, generation-default tile path.
    data_small = jax.random.normal(k_a, (8, FEAT), dtype=jnp.float32)
    out_small = proto_estimator_forward(data_small, params)
    jax.block_until_ready(out_small)
    assert out_small.shape == (FEAT,)
    assert jnp.allclose(out_small, _reference_forward(data_small, params),
                        atol=1e-5, rtol=1e-5)

    # 2) Odd N: unpacked [N, 64] streaming, partial last block masked in-kernel.
    data_odd = jax.random.normal(k_b, (997, FEAT), dtype=jnp.float32)
    out_odd = proto_estimator_forward(data_odd, params, block_bytes=32 * 1024)
    jax.block_until_ready(out_odd)
    assert jnp.allclose(out_odd, _reference_forward(data_odd, params),
                        atol=1e-4, rtol=1e-4)

    # 3) Larger even N: multi-block packed streaming path, pre-packed params.
    data_big = jax.random.normal(k_c, (5000, FEAT), dtype=jnp.float32)
    out_big = proto_estimator_forward(data_big, packed_params=packed,
                                      block_bytes=128 * 1024)
    jax.block_until_ready(out_big)
    assert jnp.allclose(out_big, _reference_forward(data_big, params),
                        atol=1e-4, rtol=1e-4)

    # 4) bf16 input streamed natively (no wrapper astype), upcast in-kernel.
    data_bf16 = jax.random.normal(k_d, (2048, FEAT), dtype=jnp.float32).astype(jnp.bfloat16)
    out_bf16 = proto_estimator_forward(data_bf16, params, block_bytes=64 * 1024)
    jax.block_until_ready(out_bf16)
    assert jnp.allclose(out_bf16, _reference_forward(data_bf16, params),
                        atol=1e-4, rtol=1e-4)

    print("KERNEL_OK")
</pallas_src>

<mosaic_0001>
module attributes {stable_mosaic.version = 11 : i64} {
  func.func @_partial_sum_kernel(%arg0: i32, %arg1: i32, %arg2: memref<4x128xf32, #tpu.memory_space<vmem>>, %arg3: memref<1x8x128xf32, #tpu.memory_space<vmem>>) attributes {dimension_semantics = [#tpu.dimension_semantics<parallel>, #tpu.dimension_semantics<arbitrary>], iteration_bounds = array<i64: 1, 1>, scalar_prefetch = 0 : i64, scratch_operands = 0 : i64, tpu.core_type = #tpu.core_type<tc>, window_params = [{transform_indices = @transform_0, window_bounds = array<i64: 4, 128>}, {transform_indices = @transform_1, window_bounds = array<i64: 1, 8, 128>}]} {
    %c0_i32 = arith.constant 0 : i32
    %0 = arith.cmpi eq, %arg1, %c0_i32 : i32
    %1 = arith.extui %0 : i1 to i32
    %c0_i32_0 = arith.constant 0 : i32
    %2 = arith.cmpi ne, %1, %c0_i32_0 : i32
    scf.if %2 {
      %cst = arith.constant 0.000000e+00 : f32
      %11 = vector.broadcast %cst : f32 to vector<1x8x128xf32>
      %c0 = arith.constant 0 : index
      %c0_5 = arith.constant 0 : index
      %c0_6 = arith.constant 0 : index
      %12 = vector.load %arg3[%c0, %c0_5, %c0_6] : memref<1x8x128xf32, #tpu.memory_space<vmem>>, vector<1x8x128xf32>
      tpu.vector_store %arg3[%c0, %c0_5, %c0_6], %11 {strides = array<i32>} : memref<1x8x128xf32, #tpu.memory_space<vmem>>, vector<1x8x128xf32>,
    } else {
    }
    %c1_i32 = arith.constant 1 : i32
    %3 = arith.muli %arg0, %c1_i32 : i32
    %4 = arith.addi %3, %arg1 : i32
    %c0_i32_1 = arith.constant 0 : i32
    %5 = arith.cmpi slt, %4, %c0_i32_1 : i32
    %6 = arith.extui %5 : i1 to i32
    %c0_i32_2 = arith.constant 0 : i32
    %7 = arith.cmpi ne, %6, %c0_i32_2 : i32
    scf.if %7 {
      %c0 = arith.constant 0 : index
      %c0_5 = arith.constant 0 : index
      %11 = vector.load %arg2[%c0, %c0_5] : memref<4x128xf32, #tpu.memory_space<vmem>>, vector<4x128xf32>
      %cst = arith.constant dense<0.000000e+00> : vector<128xf32>
      %12 = vector.multi_reduction <add>, %11, %cst [0] : vector<4x128xf32> to vector<128xf32>
      %13 = vector.shape_cast %12 : vector<128xf32> to vector<1x128xf32>
      %c0_6 = arith.constant 0 : index
      %c0_7 = arith.constant 0 : index
      %c0_8 = arith.constant 0 : index
      %14 = vector.load %arg3[%c0_6, %c0_7, %c0_8] : memref<1x8x128xf32, #tpu.memory_space<vmem>>, vector<1x1x128xf32>
      %15 = vector.shape_cast %13 : vector<1x128xf32> to vector<1x1x128xf32>
      %16 = arith.addf %14, %15 : vector<1x1x128xf32>
      %c0_9 = arith.constant 0 : index
      %c0_10 = arith.constant 0 : index
      %c0_11 = arith.constant 0 : index
      %17 = vector.load %arg3[%c0_9, %c0_10, %c0_11] : memref<1x8x128xf32, #tpu.memory_space<vmem>>, vector<1x1x128xf32>
      tpu.vector_store %arg3[%c0_9, %c0_10, %c0_11], %16 {strides = array<i32>} : memref<1x8x128xf32, #tpu.memory_space<vmem>>, vector<1x1x128xf32>,
    } else {
    }
    %c0_i32_3 = arith.constant 0 : i32
    %8 = arith.cmpi sge, %4, %c0_i32_3 : i32
    %9 = arith.extui %8 : i1 to i32
    %c0_i32_4 = arith.constant 0 : i32
    %10 = arith.cmpi ne, %9, %c0_i32_4 : i32
    scf.if %10 {
      %c0 = arith.constant 0 : index
      %c0_5 = arith.constant 0 : index
      %11 = vector.load %arg2[%c0, %c0_5] : memref<4x128xf32, #tpu.memory_space<vmem>>, vector<4x128xf32>
      %c4_i32 = arith.constant 4 : i32
      %12 = arith.muli %4, %c4_i32 : i32
      %13 = tpu.iota {dimensions = array<i32: 0>} : vector<4x1xi32>
      %14 = vector.broadcast %12 : i32 to vector<4x1xi32>
      %15 = arith.addi %14, %13 : vector<4x1xi32>
      %c4_i32_6 = arith.constant 4 : i32
      %16 = vector.broadcast %c4_i32_6 : i32 to vector<4x1xi32>
      %17 = arith.cmpi slt, %15, %16 : vector<4x1xi32>
      %cst = arith.constant 0.000000e+00 : f32
      %18 = vector.shape_cast %17 : vector<4x1xi1> to vector<4x1xi1>
      %19 = vector.broadcast %18 : vector<4x1xi1> to vector<4x128xi1>
      %20 = vector.broadcast %cst : f32 to vector<4x128xf32>
      %21 = arith.select %19, %11, %20 : vector<4x128xi1>, vector<4x128xf32>
      %cst_7 = arith.constant dense<0.000000e+00> : vector<128xf32>
      %22 = vector.multi_reduction <add>, %21, %cst_7 [0] : vector<4x128xf32> to vector<128xf32>
      %23 = vector.shape_cast %22 : vector<128xf32> to vector<1x128xf32>
      %c0_8 = arith.constant 0 : index
      %c0_9 = arith.constant 0 : index
      %c0_10 = arith.constant 0 : index
      %24 = vector.load %arg3[%c0_8, %c0_9, %c0_10] : memref<1x8x128xf32, #tpu.memory_space<vmem>>, vector<1x1x128xf32>
      %25 = vector.shape_cast %23 : vector<1x128xf32> to vector<1x1x128xf32>
      %26 = arith.addf %24, %25 : vector<1x1x128xf32>
      %c0_11 = arith.constant 0 : index
      %c0_12 = arith.constant 0 : index
      %c0_13 = arith.constant 0 : index
      %27 = vector.load %arg3[%c0_11, %c0_12, %c0_13] : memref<1x8x128xf32, #tpu.memory_space<vmem>>, vector<1x1x128xf32>
      tpu.vector_store %arg3[%c0_11, %c0_12, %c0_13], %26 {strides = array<i32>} : memref<1x8x128xf32, #tpu.memory_space<vmem>>, vector<1x1x128xf32>,
    } else {
    }
    return
  }
  func.func @transform_0(%arg0: i32, %arg1: i32) -> (i32, i32) {
    %c1_i32 = arith.constant 1 : i32
    %0 = arith.muli %arg0, %c1_i32 : i32
    %1 = arith.addi %0, %arg1 : i32
    %c0_i32 = arith.constant 0 : i32
    %2 = arith.minsi %1, %c0_i32 : i32
    %c0_i32_0 = arith.constant 0 : i32
    %c0_i32_1 = arith.constant 0 : i32
    return %2, %c0_i32_0 : i32, i32
  }
  func.func @transform_1(%arg0: i32, %arg1: i32) -> (i32, i32, i32) {
    %c0_i32 = arith.constant 0 : i32
    %c0_i32_0 = arith.constant 0 : i32
    %c0_i32_1 = arith.constant 0 : i32
    return %arg0, %c0_i32, %c0_i32_0 : i32, i32, i32
  }
}

</mosaic_0001>

<bundles_post_ra>
// kernel: tpu_custom_call.1
= control target key start
LH: loop header
LB: loop body
LE: loop exit
PB: predicated region body
PF: predicated region fallthrough
CT: control target
= control target key end

     0   :  { %6 = vsyncpa [#allocation3], 0  ;;  %s172_s0 = inlined_call_operand.hbm [shape: f32[4,128], index: 0, kind: input, shape index: {}]   ;;  %s173_s1 = inlined_call_operand.hbm [shape: f32[1,8,128], index: 1, kind: output, shape index: {}]  }
   0x1   :  { %7 = vsyncpa [#allocation4], 0  ;;  %s18_s8 = sshll.u32 %s172_s0, 4  ;;  %s153_s9 = smov [#allocation2]   ;;  %s19_s8 = int_to_ptr.hbm [resolvable:$true] %s18_s8 }
   0x2   :  { %s20_s10 = sshll.u32 %s153_s9, 4  ;;  %s21_s10 = int_to_ptr.vmem [resolvable:$true] %s20_s10 }
   0x3   :  { %23 = dma.hbm_to_vmem [thread:$0]  %s19_s8, 64, %s21_s10, [#allocation3]  }
   0x4   :  { %149 = dma.done.wait [#allocation3], 64  }
   0x5   :  { %150 = vsyncadd [#allocation3], 4294967232  ;;  %v154_v0 = vmov 0.0   ;;  %vm67_vm0 = vcmask 1043456   ;;  %v97_v1 = vld [vmem:[#allocation2] sm:$0xf] }
   0x6   :  { %35 = vst [vmem:[#allocation5] sm:$0xff] %v154_v0  ;;  %v68_v2 = vsel %vm67_vm0, %v97_v1, 0.0  ;;  %s155_s11 = smov [#allocation5]   ;;  %s85_s14 = sshll.u32 %s173_s1, 4  ;;  %s86_s14 = int_to_ptr.hbm [resolvable:$true] %s85_s14 }
   0x7   :  { %v69_v3 = vrot.slane %v68_v2, 4  ;;  %s83_s0 = sshll.u32 %s155_s11, 4  ;;  %s84_s0 = int_to_ptr.vmem [resolvable:$true] %s83_s0 }
   0x9   :  { %v70_v4 = vadd.f32 %v69_v3, %v68_v2 }
   0xb   :  { %v71_v5 = vrot.slane %v70_v4, 2 }
   0xd   :  { %v72_v6 = vadd.f32 %v71_v5, %v70_v4  ;;  %v75_v8 = vld [vmem:[#allocation5] sm:$0x1] }
   0xf   :  { %v73_v7 = vrot.slane %v72_v6, 1 }
  0x11   :  { %v74_v9 = vadd.f32 %v73_v7, %v72_v6 }
  0x13   :  { %v76_v10 = vadd.f32 %v75_v8, %v74_v9 }
  0x15   :  { %77 = vst [vmem:[#allocation5] sm:$0x1] %v76_v10 }
  0x16   :  { %88 = dma.vmem_to_hbm [thread:$0]  %s84_s0, 128, %s86_s14, [#allocation4]  }
  0x17   :  { %151 = dma.done.wait [#allocation4], 128  }
  0x18   :  { %152 = vsyncadd [#allocation4], 4294967168 }
  0x19   :  { %93 = vsyncpa [#allocation3], 1 }
  0x1a   :  { %94 = vsyncpa [#allocation4], 1 }

</bundles_post_ra>
